<compile_context>
chip_gen: v7x
topology: tpu7x:2x2x1
jax: 0.10.0
libtpu: 0.0.40
codegen_flags: <defaults>
</compile_context>

<pallas_src>
import functools

import jax
import jax.numpy as jnp
from jax.experimental import pallas as pl
from jax.experimental.pallas import tpu as pltpu


def _round_up(x, m):
    return ((x + m - 1) // m) * m


def _vmem_capacity_bytes():
    try:
        return int(pltpu.get_tpu_info().vmem_capacity_bytes)
    except Exception:
        return 64 * 1024 * 1024  # conservative: v7x per-TensorCore VMEM


def _ffn_kernel(x_ref, w1_ref, b1_ref, w2_ref, b2_ref, o_ref, acc_ref, *, compute_dtype):
    # Grid: (row_tile i, hidden_chunk k).  acc_ref is a resident f32 accumulator.
    k = pl.program_id(1)

    @pl.when(k == 0)
    def _init():
        acc_ref[...] = jnp.zeros_like(acc_ref)

    # Cast activations to the MXU compute dtype *inside* the kernel (no wrapper pass).
    x = x_ref[...]
    if x.dtype != compute_dtype:
        x = x.astype(compute_dtype)

    # First linear over this hidden chunk: f32 accumulation, bias added in f32.
    y = jnp.dot(x, w1_ref[...], preferred_element_type=jnp.float32) + b1_ref[...]
    # Second linear: feed the MXU in the compute dtype, accumulate the chunk's
    # partial product into the resident f32 accumulator.
    y = y.astype(w2_ref.dtype)
    acc_ref[...] += jnp.dot(y, w2_ref[...], preferred_element_type=jnp.float32)

    @pl.when(k == pl.num_programs(1) - 1)
    def _finalize():
        z = acc_ref[...] + b2_ref[...]
        # ReLU applied only to the final output (matches the PyTorch module).
        o_ref[...] = jnp.maximum(z, 0.0).astype(o_ref.dtype)


def prepare_ffn_params(w1, b1, w2, b2, *, compute_dtype=jnp.bfloat16):
    """Pad feature dims to lane-dense 128-multiples and cast weights ONCE.

    PyTorch Linear stores W as (out, in); pass the transpose here, i.e.
    w1: (d_model, hidden), w2: (hidden, d_model), so the kernel computes x @ W.
    Zero padding is mathematically inert (padded bias entries and weight
    rows/cols are 0)."""
    d_model, hidden = w1.shape
    assert w2.shape == (hidden, d_model) and b1.shape == (hidden,) and b2.shape == (d_model,)
    d_model_p = _round_up(d_model, 128)
    hidden_p = _round_up(hidden, 128)
    cdt = jnp.dtype(compute_dtype if compute_dtype is not None else w1.dtype)
    w1_p = jnp.pad(w1, ((0, d_model_p - d_model), (0, hidden_p - hidden))).astype(cdt)
    w2_p = jnp.pad(w2, ((0, hidden_p - hidden), (0, d_model_p - d_model))).astype(cdt)
    b1_p = jnp.pad(b1, (0, hidden_p - hidden)).astype(jnp.float32).reshape(1, hidden_p)
    b2_p = jnp.pad(b2, (0, d_model_p - d_model)).astype(jnp.float32).reshape(1, d_model_p)
    return dict(w1=w1_p, b1=b1_p, w2=w2_p, b2=b2_p,
                d_model=d_model, hidden=hidden,
                d_model_p=d_model_p, hidden_p=hidden_p,
                compute_dtype=cdt)


def ffn_pallas(params, x, *, tm=256, tk=512):
    """x: (M, d_model) in its native dtype. Returns (M, d_model) in x.dtype."""
    d_model = params["d_model"]
    d_model_p = params["d_model_p"]
    hidden_p = params["hidden_p"]
    cdt = params["compute_dtype"]
    M, d_in = x.shape
    assert d_in == d_model
    out_dtype = x.dtype

    x_b = jnp.dtype(x.dtype).itemsize
    out_b = jnp.dtype(out_dtype).itemsize
    cdt_b = jnp.dtype(cdt).itemsize

    # Row-tile alignment: bf16 packs 16 rows per vreg; f32 needs 8.
    row_align = 16 if cdt_b < 4 else 8
    # Shrink tm so the parallel row axis has >= 2 grid steps when M is small
    # (engages the second TensorCore on megacore parts).
    tm = min(max(tm, row_align), _round_up(max(-(-M // 2), 1), row_align))

    def vmem_estimate(tm_, tk_):
        nbuf_w = 1 if tk_ == hidden_p else 2           # chunked weights double-buffer
        return (2 * tm_ * d_model_p * x_b              # x tile (native dtype), 2 bufs
                + 2 * tm_ * d_model_p * out_b          # out tile, 2 bufs
                + nbuf_w * 2 * d_model_p * tk_ * cdt_b  # W1 chunk + W2 chunk
                + nbuf_w * 8 * tk_ * 4                  # b1 chunk (sublane-padded)
                + 8 * d_model_p * 4                     # b2 (single buffer)
                + tm_ * d_model_p * 4)                  # f32 accumulator scratch

    cap = _vmem_capacity_bytes()
    budget = int(0.80 * cap)

    # Pick tk = largest 128-multiple divisor of hidden_p that is <= requested tk
    # and fits the VMEM budget; fall back to 128 otherwise.
    tk_req = min(_round_up(max(tk, 128), 128), hidden_p)
    chosen_tk = 128
    c = tk_req
    while c >= 128:
        if hidden_p % c == 0 and vmem_estimate(tm, c) <= budget:
            chosen_tk = c
            break
        c -= 128
    tk = chosen_tk
    # If even tk=128 does not fit, shrink the row tile.
    while vmem_estimate(tm, tk) > budget and tm > row_align:
        tm = max(row_align, _round_up(tm // 2, row_align))

    m_pad = _round_up(M, tm)
    grid_m = m_pad // tm
    grid_k = hidden_p // tk

    # Pad x rows/cols with zeros (inert); keep its native dtype (cast in-kernel).
    x_p = jnp.pad(x, ((0, m_pad - M), (0, d_model_p - d_model)))

    est = vmem_estimate(tm, tk)
    vmem_limit = int(min(max(32 * 1024 * 1024, est * 1.3 + (4 << 20)), 0.85 * cap))

    flops = 4 * m_pad * d_model_p * hidden_p           # two matmuls
    bytes_accessed = (m_pad * d_model_p * (x_b + out_b)
                      + 2 * d_model_p * hidden_p * cdt_b * (grid_m if grid_k > 1 else 1)
                      + (hidden_p + d_model_p) * 4)

    single = pl.Buffered(1)

    def wspec(shape, index_map):
        # Constant-index (fully resident) blocks don't need double buffering.
        if grid_k == 1:
            return pl.BlockSpec(shape, index_map, pipeline_mode=single)
        return pl.BlockSpec(shape, index_map)

    kernel = functools.partial(_ffn_kernel, compute_dtype=cdt)

    out_p = pl.pallas_call(
        kernel,
        out_shape=jax.ShapeDtypeStruct((m_pad, d_model_p), out_dtype),
        grid_spec=pltpu.PrefetchScalarGridSpec(
            num_scalar_prefetch=0,
            grid=(grid_m, grid_k),
            in_specs=[
                pl.BlockSpec((tm, d_model_p), lambda i, k: (i, 0)),        # x tile (native dtype)
                wspec((d_model_p, tk), lambda i, k: (0, k)),               # W1 column-chunk
                wspec((1, tk), lambda i, k: (0, k)),                       # b1 chunk (f32)
                wspec((tk, d_model_p), lambda i, k: (k, 0)),               # W2 row-chunk
                pl.BlockSpec((1, d_model_p), lambda i, k: (0, 0),
                             pipeline_mode=single),                        # b2 (constant)
            ],
            out_specs=pl.BlockSpec((tm, d_model_p), lambda i, k: (i, 0)),
            scratch_shapes=[pltpu.VMEM((tm, d_model_p), jnp.float32)],
        ),
        compiler_params=pltpu.CompilerParams(
            dimension_semantics=("parallel", "arbitrary"),
            vmem_limit_bytes=vmem_limit,
        ),
        cost_estimate=pl.CostEstimate(
            flops=flops, transcendentals=0, bytes_accessed=bytes_accessed),
    )(x_p, params["w1"], params["b1"], params["w2"], params["b2"])

    return out_p[:M, :d_model]


def ffn_reference(x, w1, b1, w2, b2):
    hi = jax.lax.Precision.HIGHEST
    y = jnp.dot(x, w1, precision=hi) + b1
    z = jnp.dot(y, w2, precision=hi) + b2
    return jnp.maximum(z, 0.0)


if __name__ == "__main__":
    # Small shapes consistent with the module: batch=2, seq=8, d_model=32, hidden=64.
    batch, seq, d_model, hidden = 2, 8, 32, 64

    key = jax.random.PRNGKey(0)
    kx, kw1, kb1, kw2, kb2 = jax.random.split(key, 5)

    x = jax.random.normal(kx, (batch, seq, d_model), dtype=jnp.float32)
    # PyTorch Linear stores W as (out, in); we store the transpose (in, out).
    w1 = jax.random.normal(kw1, (d_model, hidden), dtype=jnp.float32) * 0.1
    b1 = jax.random.normal(kb1, (hidden,), dtype=jnp.float32) * 0.1
    w2 = jax.random.normal(kw2, (hidden, d_model), dtype=jnp.float32) * 0.1
    b2 = jax.random.normal(kb2, (d_model,), dtype=jnp.float32) * 0.1

    x_flat = x.reshape(batch * seq, d_model)
    ref = ffn_reference(x_flat, w1, b1, w2, b2)

    # Exact-semantics check: f32 compute path, tight tolerance.
    params_f32 = prepare_ffn_params(w1, b1, w2, b2, compute_dtype=jnp.float32)
    out_f32 = ffn_pallas(params_f32, x_flat, tm=256, tk=512)
    jax.block_until_ready(out_f32)
    assert jnp.allclose(out_f32, ref, atol=1e-5, rtol=1e-5), "f32 mismatch vs reference"

    # Optimized path: bf16 MXU inputs, f32 accumulation (hidden activations are
    # bf16-quantized -> relaxed tolerance).
    params_bf16 = prepare_ffn_params(w1, b1, w2, b2, compute_dtype=jnp.bfloat16)
    out_bf16 = ffn_pallas(params_bf16, x_flat, tm=256, tk=512)
    jax.block_until_ready(out_bf16)
    assert jnp.allclose(out_bf16.astype(jnp.float32), ref, atol=2e-2, rtol=2e-2), \
        "bf16 mismatch vs reference"

    # Medium shape exercising the hidden-chunk accumulator path (grid_k > 1) and
    # multiple row tiles on the parallel axis (grid_m > 1).
    d2, h2, m2 = 128, 384, 96
    key2 = jax.random.PRNGKey(1)
    kx2, kw12, kb12, kw22, kb22 = jax.random.split(key2, 5)
    x2 = jax.random.normal(kx2, (m2, d2), dtype=jnp.float32)
    w12 = jax.random.normal(kw12, (d2, h2), dtype=jnp.float32) * 0.05
    b12 = jax.random.normal(kb12, (h2,), dtype=jnp.float32) * 0.05
    w22 = jax.random.normal(kw22, (h2, d2), dtype=jnp.float32) * 0.05
    b22 = jax.random.normal(kb22, (d2,), dtype=jnp.float32) * 0.05
    ref2 = ffn_reference(x2, w12, b12, w22, b22)
    p2 = prepare_ffn_params(w12, b12, w22, b22, compute_dtype=jnp.float32)
    out2 = ffn_pallas(p2, x2, tm=64, tk=128)   # -> grid_m=2, grid_k=3
    jax.block_until_ready(out2)
    assert jnp.allclose(out2, ref2, atol=5e-4, rtol=5e-4), "chunked-path mismatch vs reference"

    print("KERNEL_OK")
</pallas_src>

<mosaic_0001>
module attributes {stable_mosaic.version = 11 : i64} {
  func.func @_ffn_kernel(%arg0: i32, %arg1: i32, %arg2: memref<8x128xf32, #tpu.memory_space<vmem>>, %arg3: memref<128x128xf32, #tpu.memory_space<vmem>>, %arg4: memref<1x128xf32, #tpu.memory_space<vmem>>, %arg5: memref<128x128xf32, #tpu.memory_space<vmem>>, %arg6: memref<1x128xf32, #tpu.memory_space<vmem>>, %arg7: memref<8x128xf32, #tpu.memory_space<vmem>>, %arg8: memref<8x128xf32, #tpu.memory_space<vmem>>) attributes {dimension_semantics = [#tpu.dimension_semantics<parallel>, #tpu.dimension_semantics<arbitrary>], iteration_bounds = array<i64: 2, 1>, scalar_prefetch = 0 : i64, scratch_operands = 1 : i64, tpu.core_type = #tpu.core_type<tc>, window_params = [{transform_indices = @transform_0, window_bounds = array<i64: 8, 128>}, {pipeline_mode = #tpu.pipeline_mode<synchronous>, transform_indices = @transform_1, window_bounds = array<i64: 128, 128>}, {pipeline_mode = #tpu.pipeline_mode<synchronous>, transform_indices = @transform_2, window_bounds = array<i64: 1, 128>}, {pipeline_mode = #tpu.pipeline_mode<synchronous>, transform_indices = @transform_3, window_bounds = array<i64: 128, 128>}, {pipeline_mode = #tpu.pipeline_mode<synchronous>, transform_indices = @transform_4, window_bounds = array<i64: 1, 128>}, {transform_indices = @transform_5, window_bounds = array<i64: 8, 128>}]} {
    %c0_i32 = arith.constant 0 : i32
    %0 = arith.cmpi eq, %arg1, %c0_i32 : i32
    %1 = arith.extui %0 : i1 to i32
    %c0_i32_0 = arith.constant 0 : i32
    %2 = arith.cmpi ne, %1, %c0_i32_0 : i32
    scf.if %2 {
      %cst_15 = arith.constant 0.000000e+00 : f32
      %17 = vector.broadcast %cst_15 : f32 to vector<8x128xf32>
      %c0_16 = arith.constant 0 : index
      %c0_17 = arith.constant 0 : index
      %18 = vector.load %arg8[%c0_16, %c0_17] : memref<8x128xf32, #tpu.memory_space<vmem>>, vector<8x128xf32>
      tpu.vector_store %arg8[%c0_16, %c0_17], %17 {strides = array<i32>} : memref<8x128xf32, #tpu.memory_space<vmem>>, vector<8x128xf32>,
    } else {
    }
    %c0 = arith.constant 0 : index
    %c0_1 = arith.constant 0 : index
    %3 = vector.load %arg2[%c0, %c0_1] : memref<8x128xf32, #tpu.memory_space<vmem>>, vector<8x128xf32>
    %c0_2 = arith.constant 0 : index
    %c0_3 = arith.constant 0 : index
    %4 = vector.load %arg3[%c0_2, %c0_3] : memref<128x128xf32, #tpu.memory_space<vmem>>, vector<128x128xf32>
    %cst = arith.constant dense<0.000000e+00> : vector<8x128xf32>
    %5 = tpu.matmul %3, %4, %cst {dimension_numbers = #tpu.dot_dimension_numbers<[1], [0], [0], [1], [0, 0, 1, 1], [], []>} : vector<8x128xf32>, vector<128x128xf32>, vector<8x128xf32> -> vector<8x128xf32>
    %c0_4 = arith.constant 0 : index
    %c0_5 = arith.constant 0 : index
    %6 = vector.load %arg4[%c0_4, %c0_5] : memref<1x128xf32, #tpu.memory_space<vmem>>, vector<1x128xf32>
    %7 = vector.broadcast %6 : vector<1x128xf32> to vector<8x128xf32>
    %8 = arith.addf %5, %7 : vector<8x128xf32>
    %c0_6 = arith.constant 0 : index
    %c0_7 = arith.constant 0 : index
    %9 = vector.load %arg8[%c0_6, %c0_7] : memref<8x128xf32, #tpu.memory_space<vmem>>, vector<8x128xf32>
    %c0_8 = arith.constant 0 : index
    %c0_9 = arith.constant 0 : index
    %10 = vector.load %arg5[%c0_8, %c0_9] : memref<128x128xf32, #tpu.memory_space<vmem>>, vector<128x128xf32>
    %cst_10 = arith.constant dense<0.000000e+00> : vector<8x128xf32>
    %11 = tpu.matmul %8, %10, %cst_10 {dimension_numbers = #tpu.dot_dimension_numbers<[1], [0], [0], [1], [0, 0, 1, 1], [], []>} : vector<8x128xf32>, vector<128x128xf32>, vector<8x128xf32> -> vector<8x128xf32>
    %12 = arith.addf %9, %11 : vector<8x128xf32>
    %c0_11 = arith.constant 0 : index
    %c0_12 = arith.constant 0 : index
    %13 = vector.load %arg8[%c0_11, %c0_12] : memref<8x128xf32, #tpu.memory_space<vmem>>, vector<8x128xf32>
    tpu.vector_store %arg8[%c0_11, %c0_12], %12 {strides = array<i32>} : memref<8x128xf32, #tpu.memory_space<vmem>>, vector<8x128xf32>,
    %c0_i32_13 = arith.constant 0 : i32
    %14 = arith.cmpi eq, %arg1, %c0_i32_13 : i32
    %15 = arith.extui %14 : i1 to i32
    %c0_i32_14 = arith.constant 0 : i32
    %16 = arith.cmpi ne, %15, %c0_i32_14 : i32
    scf.if %16 {
      %c0_15 = arith.constant 0 : index
      %c0_16 = arith.constant 0 : index
      %17 = vector.load %arg8[%c0_15, %c0_16] : memref<8x128xf32, #tpu.memory_space<vmem>>, vector<8x128xf32>
      %c0_17 = arith.constant 0 : index
      %c0_18 = arith.constant 0 : index
      %18 = vector.load %arg6[%c0_17, %c0_18] : memref<1x128xf32, #tpu.memory_space<vmem>>, vector<1x128xf32>
      %19 = vector.broadcast %18 : vector<1x128xf32> to vector<8x128xf32>
      %20 = arith.addf %17, %19 : vector<8x128xf32>
      %cst_19 = arith.constant 0.000000e+00 : f32
      %21 = vector.broadcast %cst_19 : f32 to vector<8x128xf32>
      %22 = arith.maximumf %20, %21 : vector<8x128xf32>
      %c0_20 = arith.constant 0 : index
      %c0_21 = arith.constant 0 : index
      %23 = vector.load %arg7[%c0_20, %c0_21] : memref<8x128xf32, #tpu.memory_space<vmem>>, vector<8x128xf32>
      tpu.vector_store %arg7[%c0_20, %c0_21], %22 {strides = array<i32>} : memref<8x128xf32, #tpu.memory_space<vmem>>, vector<8x128xf32>,
    } else {
    }
    return
  }
  func.func @transform_0(%arg0: i32, %arg1: i32) -> (i32, i32) {
    %c0_i32 = arith.constant 0 : i32
    %c0_i32_0 = arith.constant 0 : i32
    return %arg0, %c0_i32 : i32, i32
  }
  func.func @transform_1(%arg0: i32, %arg1: i32) -> (i32, i32) {
    %c0_i32 = arith.constant 0 : i32
    %c0_i32_0 = arith.constant 0 : i32
    return %c0_i32, %arg1 : i32, i32
  }
  func.func @transform_2(%arg0: i32, %arg1: i32) -> (i32, i32) {
    %c0_i32 = arith.constant 0 : i32
    %c0_i32_0 = arith.constant 0 : i32
    return %c0_i32, %arg1 : i32, i32
  }
  func.func @transform_3(%arg0: i32, %arg1: i32) -> (i32, i32) {
    %c0_i32 = arith.constant 0 : i32
    %c0_i32_0 = arith.constant 0 : i32
    return %arg1, %c0_i32 : i32, i32
  }
  func.func @transform_4(%arg0: i32, %arg1: i32) -> (i32, i32) {
    %c0_i32 = arith.constant 0 : i32
    %c0_i32_0 = arith.constant 0 : i32
    %c0_i32_1 = arith.constant 0 : i32
    return %c0_i32, %c0_i32_0 : i32, i32
  }
  func.func @transform_5(%arg0: i32, %arg1: i32) -> (i32, i32) {
    %c0_i32 = arith.constant 0 : i32
    %c0_i32_0 = arith.constant 0 : i32
    return %arg0, %c0_i32 : i32, i32
  }
}

</mosaic_0001>

<bundles_post_ra>
// kernel: tpu_custom_call.1
= control target key start
LH: loop header
LB: loop body
LE: loop exit
PB: predicated region body
PF: predicated region fallthrough
CT: control target
= control target key end

     0   :  { %10 = vsyncpa [#allocation4], 0  ;;  %s1392_s0 = inlined_call_operand.hbm [shape: f32[16,128], index: 0, kind: input, shape index: {}]   ;;  %s1393_s1 = inlined_call_operand.hbm [shape: f32[128,128], index: 1, kind: input, shape index: {}]   ;;  %s1394_s2 = inlined_call_operand.vmem [shape: f32[1,128], index: 2, kind: input, shape index: {}]   ;;  %s1395_s3 = inlined_call_operand.hbm [shape: f32[128,128], index: 3, kind: input, shape index: {}]   ;;  %s1396_s4 = inlined_call_operand.vmem [shape: f32[1,128], index: 4, kind: input, shape index: {}]   ;;  %s1397_s5 = inlined_call_operand.hbm [shape: f32[16,128], index: 5, kind: output, shape index: {}]  }
   0x1   :  { %12 = vsyncpa [#allocation4 + $0x1], 0 }
   0x2   :  { %13 = vsyncpa [#allocation7], 0 }
   0x3   :  { %14 = vsyncpa [#allocation5], 0 }
   0x4   :  { %16 = vsyncpa [#allocation5 + $0x1], 0  ;;  %s1113_s18 = smov 0   ;;  %s1115_s19 = smov 0  }
   0x5   :  { %s1117_s20 = smov 0   ;;  %s1119_s21 = smov 0  }
   0x6   :  { %s1121_s22 = smov 0   ;;  %s1123_s23 = smov 0  }
   0x7 LB: > { %s640_s24 = sadd.s32 4294967295, %s1072_s23   ;;  %s641_s25 = sadd.s32 4294967294, %s1072_s23   ;;  %s1072_s23 = sphi %s1123_s23, %s22_s23   ;;  %s1068_s22 = sphi %s1121_s22, %s1419_s22   ;;  %s1064_s21 = sphi %s1119_s21, %s1418_s21   ;;  %s1060_s20 = sphi %s1117_s20, %s1417_s20   ;;  %s1056_s19 = sphi %s1115_s19, %s1416_s19   ;;  %s1052_s18 = sphi %s1113_s18, %s1415_s18  }
   0x8   : > { %p54_p0 = scmp.ne.s32.totalorder %s1056_s19, %s1052_s18  ;;  %p1147_p1 = scmp.eq.s32.totalorder %s640_s24, 0 }
   0x9   : > { %p1151_p2 = scmp.eq.s32.totalorder %s640_s24, 1  ;;  %p183_p3 = scmp.eq.s32.totalorder %s641_s25, 1 }
   0xa   : > { %s1402_s26 = scalar_select %p1147_p1, 1, 0 }
   0xb   : > { %p1157_p4 = por %p1147_p1, %p54_p0  ;;  %p642_p5 = scmp.ge.s32.totalorder %s1072_s23, 1 }
   0xc   : > { %p1162_p6 = por %p183_p3, %p54_p0  ;;  %p190_p7 = scmp.lt.s32.totalorder %s1072_s23, 3 }
   0xd   : > { %s1404_s28 = scalar_select %p1157_p4, 1, 0 }
   0xe   : > { %s1405_s29 = scalar_select %p1162_p6, 1, 0 }
   0xf   : > { %p1167_p8 = pnand %p642_p5, %p190_p7  ;;  %s1074_s6 = smov [#allocation6]  }
  0x10   : > { %s204_s7 = sshll.u32 %s1074_s6, 4  ;;  %s1075_s9 = smov [#allocation8]   ;;  %s1171_s7 = int_to_ptr.vmem [resolvable:$true] %s204_s7 }
  0x11   : > { %p824_p9 = pneg %p1167_p8  ;;  %s226_s10 = sshll.u32 %s1075_s9, 4  ;;  %s1182_s10 = int_to_ptr.vmem [resolvable:$true] %s226_s10 }
  0x12   : > { %s900_s13 = scalar_lea.hbm %s1393_s1, 2048 }
  0x13   : > { %p1178_p11 = pnand %p824_p9, %p1147_p1  ;;  %p901_p12 = scmp.ne.s32.totalorder %s1393_s1, %s900_s13 }
  0x14   : > { %p907_p5 = scmp.lt.u32.totalorder %s900_s13, %s1393_s1 }
  0x15   : > { %p902_p13 = pneg %p1178_p11 }
  0x17   : > { %p903_p0 = pnand %p902_p13, %p901_p12 }
  0x19   : > { %p904_p3 = pneg %p903_p0 }
  0x1b   : > { %p909_p7 = pnand %p907_p5, %p904_p3 }
  0x1d   : > { %912 = shalt.err (!%p909_p7)
}
  0x1e   : > { %s913_s24 = scalar_lea.vmem %s1171_s7, 2048  ;;  %p921_p1 = scmp.lt.s32.totalorder %s1171_s7, %s1171_s7 }
  0x1f   : > { %p914_p9 = scmp.ne.s32.totalorder %s1171_s7, %s913_s24  ;;  %p922_p12 = scmp.lt.s32.totalorder %s913_s24, %s913_s24 }
  0x21   : > { %p916_p10 = pnand %p914_p9, %p902_p13  ;;  %p923_p0 = por %p922_p12, %p921_p1 }
  0x23   : > { %p917_p6 = pneg %p916_p10 }
  0x25   : > { %p924_p4 = pnand %p923_p0, %p917_p6 }
  0x27   : > { %927 = shalt.err (!%p924_p4)
}
  0x28   : > { %s1076_s25 = smov 128   ;;  %s1077_s6 = smov 8  }
  0x29   : > { %827 = dma.hbm_to_vmem [thread:$0]  (!%p1178_p11), %s1393_s1, 2048, %s1171_s7, [#allocation7], %s1076_s25, %s1076_s25, %s1077_s6  }
  0x2a   : > { %s928_s14 = scalar_lea.hbm %s1395_s3, 2048 }
  0x2b   : > { %p929_p1 = scmp.ne.s32.totalorder %s1395_s3, %s928_s14  ;;  %p935_p10 = scmp.lt.u32.totalorder %s928_s14, %s1395_s3 }
  0x2d   : > { %p931_p4 = pnand %p929_p1, %p902_p13 }
  0x2f   : > { %p932_p6 = pneg %p931_p4 }
  0x31   : > { %p937_p3 = pnand %p935_p10, %p932_p6 }
  0x33   : > { %940 = shalt.err (!%p937_p3)
}
  0x34   : > { %s941_s7 = scalar_lea.vmem %s1182_s10, 2048  ;;  %p949_p12 = scmp.lt.s32.totalorder %s1182_s10, %s1182_s10 }
  0x35   : > { %p942_p5 = scmp.ne.s32.totalorder %s1182_s10, %s941_s7  ;;  %p950_p0 = scmp.lt.s32.totalorder %s941_s7, %s941_s7 }
  0x37   : > { %p944_p7 = pnand %p942_p5, %p902_p13  ;;  %p951_p1 = por %p950_p0, %p949_p12 }
  0x39   : > { %p945_p9 = pneg %p944_p7 }
  0x3b   : > { %p952_p4 = pnand %p951_p1, %p945_p9 }
  0x3d   : > { %955 = shalt.err (!%p952_p4)
}
  0x3e   : > { %830 = dma.hbm_to_vmem [thread:$0]  (!%p1178_p11), %s1395_s3, 2048, %s1182_s10, [#allocation7], %s1076_s25, %s1076_s25, %s1077_s6  }
  0x3f   : > { %s34_s12 = sadd.s32 1, %s1068_s22  ;;  %s41_s13 = sadd.s32 1, %s1060_s20 }
  0x40   : > { %p36_p13 = scmp.ge.s32.totalorder %s34_s12, 2  ;;  %p48_p6 = scmp.ne.s32.totalorder %s1060_s20, %s1056_s19 }
  0x41   : > { %p49_p10 = scmp.eq.s32.totalorder %s1072_s23, 0  ;;  %p841_p3 = scmp.lt.s32.totalorder %s1072_s23, 2 }
  0x42   : > { %s1421_s12 = smov (%p36_p13, %s34_s12), 0  ;;  %p1246_p7 = por %p1151_p2, %p48_p6 }
  0x43   : > { %p50_p5 = por %p49_p10, %p48_p6  ;;  %s38_s14 = ssub.s32 %s1068_s22, %s1421_s12 }
  0x44   : > { %s1408_s8 = scalar_select %p1246_p7, 1, 0 }
  0x45   : > { %s243_s15 = sand.u32 1, %s1060_s20   ;;  %p39_p9 = scmp.eq.s32.totalorder %s38_s14, 0 }
  0x46   : > { %s647_s10 = sshll.u32 %s243_s15, 3  ;;  %s648_s25 = sshll.u32 %s1068_s22, 7 }
  0x47   : > { %s1255_s6 = scalar_select %p39_p9, %s1060_s20, %s41_s13  }
  0x48   : > { %s1260_s24 = scalar_lea.hbm %s1392_s0, %s648_s25  ;;  %s247_s27 = scalar_lea.vmem [#allocation3], %s647_s10 }
  0x49   : > { %s254_s7 = sshll.u32 %s247_s27, 4  ;;  %p1264_p2 = pnand %p841_p3, %p50_p5  ;;  %s1268_s7 = int_to_ptr.vmem [resolvable:$true] %s254_s7 }
  0x4a   : > { %s244_s11 = scalar_lea.sflag [#allocation4], %s243_s15  ;;  %s956_s13 = scalar_lea.hbm %s1260_s24, 128 }
  0x4b   : > { %p957_p11 = scmp.ne.s32.totalorder %s1260_s24, %s956_s13  ;;  %p958_p12 = pneg %p1264_p2 }
  0x4c   : > { %s961_s25 = scalar_lea.hbm %s1392_s0, 256  ;;  %p962_p4 = scmp.lt.u32.totalorder %s1260_s24, %s1392_s0 }
  0x4d   : > { %p959_p0 = pnand %p958_p12, %p957_p11  ;;  %p963_p13 = scmp.lt.u32.totalorder %s961_s25, %s956_s13 }
  0x4e   : > { %p965_p10 = scmp.lt.u32.totalorder %s956_s13, %s1260_s24 }
  0x4f   : > { %p960_p1 = pneg %p959_p0  ;;  %p964_p6 = por %p963_p13, %p962_p4 }
  0x51   : > { %p966_p3 = por %p965_p10, %p964_p6 }
  0x53   : > { %p967_p5 = pnand %p966_p3, %p960_p1 }
  0x55   : > { %970 = shalt.err (!%p967_p5)
}
  0x56   : > { %s971_s15 = scalar_lea.vmem %s1268_s7, 128  ;;  %s1078_s27 = smov [#allocation3]  }
  0x57   : > { %p972_p9 = scmp.ne.s32.totalorder %s1268_s7, %s971_s15  ;;  %s976_s14 = sshll.u32 %s1078_s27, 4  ;;  %s977_s14 = int_to_ptr.vmem [resolvable:$false] %s976_s14 }
  0x58   : > { %s978_s10 = scalar_lea.vmem %s977_s14, 256  ;;  %p979_p7 = scmp.lt.s32.totalorder %s1268_s7, %s977_s14 }
  0x59   : > { %p974_p11 = pnand %p972_p9, %p958_p12  ;;  %p980_p4 = scmp.lt.s32.totalorder %s978_s10, %s971_s15 }
  0x5b   : > { %p975_p0 = pneg %p974_p11  ;;  %p981_p13 = por %p980_p4, %p979_p7 }
  0x5d   : > { %p982_p6 = pnand %p981_p13, %p975_p0 }
  0x5f   : > { %985 = shalt.err (!%p982_p6)
}
  0x60   : > { %834 = dma.hbm_to_vmem [thread:$0]  (!%p1264_p2), %s1260_s24, 128, %s1268_s7, %s244_s11  }
  0x61   : > { %263 = sbr.rel (%p1167_p8) target bundleno = 587 (0x24b), region = 40  ;;  %s1298_s13 = sand.u32 (!%p1167_p8), 1, %s1056_s19  }
  0x62   : > { %s650_s25 = sshll.u32 (!%p1167_p8), %s1298_s13, 3  ;;  %s266_s16 = scalar_lea.sflag (!%p1167_p8), [#allocation4], %s1298_s13 }
  0x63   : > { %s1304_s17 = scalar_lea.vmem (!%p1167_p8), [#allocation3], %s650_s25  ;;  %p1410_p7 = scmp.ne.s32.totalorder (!%p1167_p8), %s1404_s28, 0 }
  0x68   : > { %1039 = dma.done.wait (%p1410_p7), %s266_s16, 128  }
  0x69   : > { %1041 = vsyncadd (%p1410_p7), %s266_s16, 4294967168  ;;  %p1411_p2 = scmp.ne.s32.totalorder %s1402_s26, 0 }
  0x6b   : > { %1043 = dma.done.wait (%p1411_p2), [#allocation7], 4096  }
  0x6c   : > { %1045 = vsyncadd (%p1411_p2), [#allocation7], 4294963200  ;;  %v1079_v0 = vmov 0.0|0.0   ;;  %vm1080_vm0 = vmmov 0   ;;  %v1081_v1 = vmov 0.0   ;;  %v317_v2 = vld [vmem:[#allocation6] sm:$0xff] }
  0x6d   : > { %764 = vmatprep.subr.bf16.mxu0 %v1079_v0  ;;  %726 = vmatprep.mubr.msk.f32.mxu0 %vm1080_vm0, %v1081_v1  ;;  %v318_v3 = vld [vmem:[#allocation6 + $0x8] sm:$0xff]  ;;  %v319_v4 = vld [vmem:[#allocation6 + $0x10] sm:$0xff]  ;;  %v320_v6 = vld [vmem:[#allocation6 + $0x18] sm:$0xff]  ;;  %s657_s7 = sshll.u32 %s1064_s21, 7  ;;  %s306_s9 = scalar_lea.vmem [#allocation9], %s650_s25 }
  0x6e   : > { %788 = vmatprep.subr.bf16.mxu1 %v1079_v0  ;;  %761 = vmatprep.mubr.msk.f32.mxu1 %vm1080_vm0, %v1081_v1  ;;  %v765_v5 = vpack.c.bf16 %v318_v3, %v317_v2  ;;  %v768_v7 = vpack.c.bf16 %v320_v6, %v319_v4  ;;  %v321_v8 = vld [vmem:[#allocation6 + $0x20] sm:$0xff]  ;;  %v322_v9 = vld [vmem:[#allocation6 + $0x28] sm:$0xff]  ;;  %v413_v12 = vld [vmem:[#allocation8 + $0x10] sm:$0xff]  ;;  %s527_s11 = sshll.u32 %s306_s9, 4  ;;  %s1343_s14 = scalar_lea.hbm %s1397_s5, %s657_s7  ;;  %s1345_s11 = int_to_ptr.vmem [resolvable:$true] %s527_s11 }
  0x6f   : > { %v411_v10 = vld [vmem:[#allocation8] sm:$0xff]  ;;  %v412_v11 = vld [vmem:[#allocation8 + $0x8] sm:$0xff]  ;;  %v414_v13 = vld [vmem:[#allocation8 + $0x18] sm:$0xff]  ;;  %v771_v14 = vpack.c.bf16 %v322_v9, %v321_v8  ;;  %s514_s10 = scalar_lea.sflag [#allocation5], %s1298_s13  ;;  %s986_s16 = scalar_lea.vmem %s1345_s11, 128 }
  0x70   : > { %766 = vmatpush3.bf16.msra.mxu0 %v765_v5  ;;  %v789_v15 = vpack.c.bf16 %v412_v11, %v411_v10  ;;  %v323_v16 = vld [vmem:[#allocation6 + $0x30] sm:$0xff]  ;;  %v324_v17 = vld [vmem:[#allocation6 + $0x38] sm:$0xff]  ;;  %v792_v18 = vpack.c.bf16 %v414_v13, %v413_v12  ;;  %v415_v19 = vld [vmem:[#allocation8 + $0x20] sm:$0xff]  ;;  %p987_p8 = scmp.ne.s32.totalorder %s1345_s11, %s986_s16  ;;  %p1412_p12 = scmp.ne.s32.totalorder %s1408_s8, 0 }
  0x71   : > { %767 = vmatprep.subr.bf16.mxu0 %v1079_v0  ;;  %v416_v20 = vld [vmem:[#allocation8 + $0x28] sm:$0xff]  ;;  %v774_v21 = vpack.c.bf16 %v324_v17, %v323_v16  ;;  %v325_v22 = vld [vmem:[#allocation6 + $0x40] sm:$0xff]  ;;  %v417_v25 = vld [vmem:[#allocation8 + $0x30] sm:$0xff]  ;;  %s1082_s21 = smov [#allocation9]  }
  0x72   : > { %790 = vmatpush3.bf16.msra.mxu1 %v789_v15  ;;  %v326_v23 = vld [vmem:[#allocation6 + $0x48] sm:$0xff]  ;;  %v795_v24 = vpack.c.bf16 %v416_v20, %v415_v19  ;;  %v418_v26 = vld [vmem:[#allocation8 + $0x38] sm:$0xff]  ;;  %v327_v28 = vld [vmem:[#allocation6 + $0x50] sm:$0xff]  ;;  %p988_p1 = pnand %p987_p8, %p1412_p12  ;;  %s990_s25 = sshll.u32 %s1082_s21, 4  ;;  %s991_s25 = int_to_ptr.vmem [resolvable:$false] %s990_s25 }
  0x73   : > { %791 = vmatprep.subr.bf16.mxu1 %v1079_v0  ;;  %v777_v27 = vpack.c.bf16 %v326_v23, %v325_v22  ;;  %v328_v29 = vld [vmem:[#allocation6 + $0x58] sm:$0xff]  ;;  %v798_v30 = vpack.c.bf16 %v418_v26, %v417_v25  ;;  %v419_v31 = vld [vmem:[#allocation8 + $0x40] sm:$0xff]  ;;  %v420_v32 = vld [vmem:[#allocation8 + $0x48] sm:$0xff]  ;;  %p993_p3 = scmp.lt.s32.totalorder %s1345_s11, %s991_s25 }
  0x74   : > { %769 = vmatpush3.bf16.msra.mxu0 %v768_v7  ;;  %v780_v33 = vpack.c.bf16 %v328_v29, %v327_v28  ;;  %v329_v34 = vld [vmem:[#allocation6 + $0x60] sm:$0xff]  ;;  %v330_v35 = vld [vmem:[#allocation6 + $0x68] sm:$0xff]  ;;  %v801_v36 = vpack.c.bf16 %v420_v32, %v419_v31  ;;  %v421_v37 = vld [vmem:[#allocation8 + $0x50] sm:$0xff]  ;;  %p989_p10 = pneg %p988_p1 }
  0x75   : > { %770 = vmatprep.subr.bf16.mxu0 %v1079_v0  ;;  %v422_v38 = vld [vmem:[#allocation8 + $0x58] sm:$0xff]  ;;  %v783_v39 = vpack.c.bf16 %v330_v35, %v329_v34  ;;  %v331_v40 = vld [vmem:[#allocation6 + $0x70] sm:$0xff]  ;;  %v423_v43 = vld [vmem:[#allocation8 + $0x60] sm:$0xff] }
  0x76   : > { %793 = vmatpush3.bf16.msra.mxu1 %v792_v18  ;;  %v332_v41 = vld [vmem:[#allocation6 + $0x78] sm:$0xff]  ;;  %v804_v42 = vpack.c.bf16 %v422_v38, %v421_v37  ;;  %v424_v44 = vld [vmem:[#allocation8 + $0x68] sm:$0xff]  ;;  %v425_v48 = vld [vmem:[#allocation8 + $0x70] sm:$0xff] }
  0x77   : > { %794 = vmatprep.subr.bf16.mxu1 %v1079_v0  ;;  %v786_v45 = vpack.c.bf16 %v332_v41, %v331_v40  ;;  %v807_v46 = vpack.c.bf16 %v424_v44, %v423_v43  ;;  %v316_v47 = vld [vmem:[%s1304_s17] sm:$0xff]  ;;  %s992_s17 = scalar_lea.vmem %s991_s25, 256 }
  0x78   : > { %772 = vmatpush3.bf16.msra.mxu0 %v771_v14  ;;  %v426_v49 = vld [vmem:[#allocation8 + $0x78] sm:$0xff]  ;;  %v654_v51 = vld [vmem:[%s1394_s2] ss:$0 sm:$0xff]  ;;  %p994_p5 = scmp.lt.s32.totalorder %s992_s17, %s986_s16 }
  0x79   : > { %773 = vmatprep.subr.bf16.mxu0 %v1079_v0  ;;  %v810_v50 = vpack.c.bf16 %v426_v49, %v425_v48  ;;  %v655_v55 = vld [vmem:[%s1396_s4] ss:$0 sm:$0xff] }
  0x7a   : > { %796 = vmatpush3.bf16.msra.mxu1 %v795_v24  ;;  %p995_p9 = por %p994_p5, %p993_p3 }
  0x7b   : > { %797 = vmatprep.subr.bf16.mxu1 %v1079_v0 }
  0x7c   : > { %775 = vmatpush3.bf16.msra.mxu0 %v774_v21  ;;  %p996_p11 = pnand %p995_p9, %p989_p10 }
  0x7d   : > { %776 = vmatprep.subr.bf16.mxu0 %v1079_v0 }
  0x7e   : > { %799 = vmatpush3.bf16.msra.mxu1 %v798_v30 }
  0x7f   : > { %800 = vmatprep.subr.bf16.mxu1 %v1079_v0 }
  0x80   : > { %778 = vmatpush3.bf16.msra.mxu0 %v777_v27 }
  0x81   : > { %779 = vmatprep.subr.bf16.mxu0 %v1079_v0 }
  0x82   : > { %802 = vmatpush3.bf16.msra.mxu1 %v801_v36 }
  0x83   : > { %803 = vmatprep.subr.bf16.mxu1 %v1079_v0 }
  0x84   : > { %781 = vmatpush3.bf16.msra.mxu0 %v780_v33 }
  0x85   : > { %782 = vmatprep.subr.bf16.mxu0 %v1079_v0 }
  0x86   : > { %805 = vmatpush3.bf16.msra.mxu1 %v804_v42 }
  0x87   : > { %806 = vmatprep.subr.bf16.mxu1 %v1079_v0 }
  0x88   : > { %784 = vmatpush3.bf16.msra.mxu0 %v783_v39 }
  0x89   : > { %785 = vmatprep.subr.bf16.mxu0 %v1079_v0 }
  0x8a   : > { %808 = vmatpush3.bf16.msra.mxu1 %v807_v46 }
  0x8b   : > { %809 = vmatprep.subr.bf16.mxu1 %v1079_v0 }
  0x8c   : > { %787 = vmatpush3.bf16.msra.mxu0 %v786_v45 }
  0x8e   : > { %811 = vmatpush3.bf16.msra.mxu1 %v810_v50 }
  0x8f   : > { %727 = vmatmul.mubr.f32.vlgmr.msra.gmra.mrb[0].mxu0 %v316_v47 }
 0x162   : > { %v406_v52 = vpop.f32.mrb[0].mxu0 }
 0x163   : > { %v407_v53 = vadd.f32 %v654_v51, %v406_v52  ;;  %v728_v54 = vpop.f32.mrb[1].mxu0 }
 0x165   : > { %762 = vmatmul.mubr.f32.vlgmr.msra.gmra.mrb[0].mxu1 %v407_v53 }
 0x238   : > { %v493_v56 = vpop.f32.mrb[0].mxu1 }
 0x239   : > { %v510_v57 = vadd.f32 %v655_v55, %v493_v56  ;;  %v763_v58 = vpop.f32.mrb[1].mxu1 }
 0x23b   : > { %v511_v59 = vmax.f32 %v510_v57, 0.0 }
 0x23d   : > { %512 = vst [vmem:[%s306_s9] sm:$0xff] %v511_v59 }
 0x23e   : > { %999 = shalt.err (!%p996_p11)
}
 0x23f   : > { %s1000_s13 = scalar_lea.hbm %s1343_s14, 128  ;;  %s1004_s30 = scalar_lea.hbm %s1397_s5, 256 }
 0x240   : > { %p1001_p0 = scmp.ne.s32.totalorder %s1343_s14, %s1000_s13  ;;  %p1005_p6 = scmp.lt.u32.totalorder %s1343_s14, %s1397_s5 }
 0x241   : > { %p1006_p7 = scmp.lt.u32.totalorder %s1004_s30, %s1000_s13  ;;  %p1008_p8 = scmp.lt.u32.totalorder %s1000_s13, %s1343_s14 }
 0x242   : > { %p1002_p4 = pnand %p1001_p0, %p1412_p12 }
 0x243   : > { %p1007_p2 = por %p1006_p7, %p1005_p6 }
 0x244   : > { %p1003_p13 = pneg %p1002_p4 }
 0x245   : > { %p1009_p1 = por %p1008_p8, %p1007_p2 }
 0x247   : > { %p1010_p10 = pnand %p1009_p1, %p1003_p13 }
 0x249   : > { %1013 = shalt.err (!%p1010_p10)
}
 0x24a   : > { %822 = dma.vmem_to_hbm [thread:$0]  (%p1412_p12), %s1345_s11, 128, %s1343_s14, %s514_s10  }
 0x24b PF: > { %s539_s9 = sand.u32 1, %s1052_s18   ;;  %p1413_p3 = scmp.ne.s32.totalorder %s1405_s29, 0 }
 0x24c   : > { %p1414_p5 = scmp.ge.s32.totalorder %s1072_s23, 2  ;;  %s540_s15 = scalar_lea.sflag [#allocation5], %s539_s9 }
 0x24e   : > { %p836_p9 = pnand %p1414_p5, %p1413_p3 }
 0x250   : > { %1047 = dma.done.wait (!%p836_p9), %s540_s15, 128  }
 0x251   : > { %1049 = vsyncadd (!%p836_p9), %s540_s15, 4294967168  ;;  %s22_s23 = sadd.s32 1, %s1072_s23   ;;  %s1415_s18 = smov %s1056_s19 }
 0x252   : > { %p19_p11 = scmp.ge.s32.totalorder %s22_s23, 4   ;;  %s1416_s19 = smov %s1060_s20 }
 0x253   : > { %s1417_s20 = smov %s1255_s6  ;;  %s1418_s21 = smov %s1068_s22 }
 0x254   : > { %s1419_s22 = smov %s1421_s12  ;;  %21 = sbr.rel (!%p19_p11) target bundleno = 7 (0x7), region = 106 }
 0x25b   :  { %545 = vsyncpa [#allocation4], 1 }
 0x25c   :  { %547 = vsyncpa [#allocation4 + $0x1], 1 }
 0x25d   :  { %548 = vsyncpa [#allocation7], 1 }
 0x25e   :  { %549 = vsyncpa [#allocation5], 1 }
 0x25f   :  { %551 = vsyncpa [#allocation5 + $0x1], 1 }

</bundles_post_ra>
